<compile_context>
chip_gen: v7x
topology: tpu7x:2x2x1
jax: 0.10.0
libtpu: 0.0.40
codegen_flags: <defaults>
</compile_context>

<pallas_src>
import functools

import jax
import jax.numpy as jnp
from jax.experimental import pallas as pl
from jax.experimental.pallas import tpu as pltpu


def _round_up(x, m):
    return ((x + m - 1) // m) * m


def _activ(x, kind):
    if kind == "relu":
        return jnp.maximum(x, 0.0)
    elif kind == "elu":
        return jnp.where(x > 0, x, jnp.expm1(x))
    raise ValueError(f"unknown activation {kind}")


def rff_critic_kernel(mean_ref, log_std_ref, noise_ref, expand_ref, avg_ref,
                      wa_ref, ba_ref, wb_ref, bb_ref, wc_ref, bc_ref,
                      q_ref, *, q_activ):
    # Per-grid-step batch block.
    mean = mean_ref[...]                     # (Bb, D)
    std = jnp.exp(log_std_ref[...])          # (Bb, D)  (EUP)
    noise = noise_ref[...]                   # (Bb*N, D)  pre-scaled by c_noise
    expand = expand_ref[...]                 # (Bb*N, Bb) one-hot row-expansion
    avg = avg_ref[...]                       # (Bb, Bb*N) averaging (1/N folded in)

    # x[b*N + n, :] = mean[b] + std[b] * (noise[n] * c_noise)
    # Row expansion done on the MXU with one-hot matmuls (no 3-D reshape).
    mean_e = jnp.dot(expand, mean, preferred_element_type=jnp.float32)   # (Bb*N, D)
    std_e = jnp.dot(expand, std, preferred_element_type=jnp.float32)     # (Bb*N, D)
    x = mean_e + std_e * noise                                           # (Bb*N, D)

    # Fused two-head MLP: layer1 concat, layer2/3 block-diagonal.
    h1 = _activ(jnp.dot(x, wa_ref[...], preferred_element_type=jnp.float32)
                + ba_ref[...], q_activ)                                  # (Bb*N, 2H)
    m = jnp.dot(avg, h1, preferred_element_type=jnp.float32)             # (Bb, 2H)
    h2 = _activ(jnp.dot(m, wb_ref[...], preferred_element_type=jnp.float32)
                + bb_ref[...], q_activ)                                  # (Bb, 2H)
    q_ref[...] = (jnp.dot(h2, wc_ref[...], preferred_element_type=jnp.float32)
                  + bc_ref[...])                                         # (Bb, 2)


def _pick_block_b(B, D, H, N, vmem_budget=20 * 1024 * 1024):
    """Largest multiple-of-8 batch block (<=128) whose rough f32 VMEM
    footprint (double-buffered weights/noise + live temps) fits the budget."""
    cap = min(128, max(8, _round_up(B, 8)))
    best = 8
    cand = 8
    while cand <= cap:
        R = cand * N
        bytes_needed = 4 * (
            2 * (D * 2 * H + 2 * H * 2 * H)     # wa, wb (double-buffered)
            + 2 * (R * D)                       # tiled noise
            + 2 * (R * cand)                    # expand + avg
            + 4 * (cand * D)                    # mean / log_std (double-buffered)
            + 3 * (R * D)                       # x, mean_e, std_e temps
            + 2 * (R * 2 * H))                  # h1 + activation temp
        if bytes_needed <= vmem_budget:
            best = cand
        cand += 8
    return best


def rff_critic_forward(mean, log_std, noise, params, *, c_noise,
                       q_activ="relu", block_b=None):
    (w1, b1, w2, b2, w3, b3, w4, b4, w5, b5, w6, b6) = params
    B, D = mean.shape
    N = noise.shape[0]
    H = w1.shape[1]

    # ---- Head fusion (done once per call in the wrapper) ----
    wa = jnp.concatenate([w1, w4], axis=1)                    # (D, 2H)
    ba = jnp.concatenate([b1, b4], axis=1)                    # (1, 2H)
    zH = jnp.zeros((H, H), jnp.float32)
    wb = jnp.block([[w2, zH], [zH, w5]])                      # (2H, 2H)
    bb = jnp.concatenate([b2, b5], axis=1)                    # (1, 2H)
    z1 = jnp.zeros((H, 1), jnp.float32)
    wc = jnp.block([[w3, z1], [z1, w6]])                      # (2H, 2)
    bc = jnp.concatenate([b3, b6], axis=1)                    # (1, 2)

    # ---- Batch tiling (multiple of 8 sublanes per block) ----
    if block_b is None:
        block_b = _pick_block_b(B, D, H, N)
    block_b = max(8, (block_b // 8) * 8)
    Bp = _round_up(B, block_b)
    pad = Bp - B
    if pad:
        mean_p = jnp.pad(mean, ((0, pad), (0, 0)))
        log_std_p = jnp.pad(log_std, ((0, pad), (0, 0)))
    else:
        mean_p, log_std_p = mean, log_std

    R = block_b * N  # rows of x per batch block

    # Pre-scaled, pre-tiled noise (identical for every batch block).
    noise_tiled = jnp.tile(noise.astype(jnp.float32) * c_noise, (block_b, 1))  # (R, D)

    # One-hot expansion (R, block_b) and averaging (block_b, R) with 1/N folded in.
    rows = jnp.arange(R)
    expand = (rows[:, None] // N == jnp.arange(block_b)[None, :]).astype(jnp.float32)
    avg = expand.T * (1.0 / N)

    kernel = functools.partial(rff_critic_kernel, q_activ=q_activ)

    q = pl.pallas_call(
        kernel,
        out_shape=jax.ShapeDtypeStruct((Bp, 2), jnp.float32),
        grid=(Bp // block_b,),
        in_specs=[
            pl.BlockSpec((block_b, D), lambda i: (i, 0)),      # mean
            pl.BlockSpec((block_b, D), lambda i: (i, 0)),      # log_std
            pl.BlockSpec((R, D), lambda i: (0, 0)),            # noise_tiled (resident)
            pl.BlockSpec((R, block_b), lambda i: (0, 0)),      # expand
            pl.BlockSpec((block_b, R), lambda i: (0, 0)),      # avg
            pl.BlockSpec((D, 2 * H), lambda i: (0, 0)),        # wa
            pl.BlockSpec((1, 2 * H), lambda i: (0, 0)),        # ba
            pl.BlockSpec((2 * H, 2 * H), lambda i: (0, 0)),    # wb
            pl.BlockSpec((1, 2 * H), lambda i: (0, 0)),        # bb
            pl.BlockSpec((2 * H, 2), lambda i: (0, 0)),        # wc
            pl.BlockSpec((1, 2), lambda i: (0, 0)),            # bc
        ],
        out_specs=pl.BlockSpec((block_b, 2), lambda i: (i, 0)),
        compiler_params=pltpu.CompilerParams(
            dimension_semantics=("parallel",),
            vmem_limit_bytes=64 * 1024 * 1024),
    )(mean_p, log_std_p, noise_tiled, expand, avg, wa, ba, wb, bb, wc, bc)

    q = q[:B]
    return q[:, 0:1], q[:, 1:2]


if __name__ == "__main__":
    # Small shapes consistent with the module's forward.
    B, D, N, H = 4, 32, 20, 32          # batch, feature_dim, num_noise, hidden_dim
    c_noise = 0.5

    key = jax.random.PRNGKey(0)
    keys = jax.random.split(key, 16)

    def lin_init(kw, kb, fan_in, fan_out):
        # PyTorch nn.Linear default: U(-1/sqrt(fan_in), 1/sqrt(fan_in))
        bound = 1.0 / (fan_in ** 0.5)
        w = jax.random.uniform(kw, (fan_in, fan_out), jnp.float32, -bound, bound)
        b = jax.random.uniform(kb, (1, fan_out), jnp.float32, -bound, bound)
        return w, b

    w1, b1 = lin_init(keys[0], keys[1], D, H)
    w2, b2 = lin_init(keys[2], keys[3], H, H)
    w3, b3 = lin_init(keys[4], keys[5], H, 1)
    w4, b4 = lin_init(keys[6], keys[7], D, H)
    w5, b5 = lin_init(keys[8], keys[9], H, H)
    w6, b6 = lin_init(keys[10], keys[11], H, 1)
    params = (w1, b1, w2, b2, w3, b3, w4, b4, w5, b5, w6, b6)

    mean = jax.random.normal(keys[12], (B, D), jnp.float32)
    log_std = 0.1 * jax.random.normal(keys[13], (B, D), jnp.float32)
    # torch.randn equivalent (deterministic here); passed in as kernel input.
    noise = jax.random.normal(keys[14], (N, D), jnp.float32)

    # Pure-JAX reference to verify kernel semantics.
    def ref_forward(q_activ):
        def act(x):
            if q_activ == "relu":
                return jnp.maximum(x, 0.0)
            return jnp.where(x > 0, x, jnp.expm1(x))
        std = jnp.exp(log_std)
        x = mean[:, None, :] + std[:, None, :] * noise[None, :, :] * c_noise
        x = x.reshape(-1, D)

        def head(wA, bA, wB, bB, wC, bC):
            h = act(x @ wA + bA)
            m = h.reshape(B, N, -1).mean(axis=1)
            h2 = act(m @ wB + bB)
            return h2 @ wC + bC

        return head(w1, b1, w2, b2, w3, b3), head(w4, b4, w5, b5, w6, b6)

    for q_activ in ("relu", "elu"):
        q1, q2 = rff_critic_forward(mean, log_std, noise, params,
                                    c_noise=c_noise, q_activ=q_activ)
        jax.block_until_ready((q1, q2))
        r1, r2 = ref_forward(q_activ)
        assert q1.shape == (B, 1) and q2.shape == (B, 1)
        assert jnp.allclose(q1, r1, atol=1e-4, rtol=1e-4), (q_activ, q1, r1)
        assert jnp.allclose(q2, r2, atol=1e-4, rtol=1e-4), (q_activ, q2, r2)

    print("KERNEL_OK")
</pallas_src>

<mosaic_0001>
module attributes {stable_mosaic.version = 11 : i64} {
  func.func @rff_critic_kernel(%arg0: i32, %arg1: memref<8x32xf32, #tpu.memory_space<vmem>>, %arg2: memref<8x32xf32, #tpu.memory_space<vmem>>, %arg3: memref<160x32xf32, #tpu.memory_space<vmem>>, %arg4: memref<160x8xf32, #tpu.memory_space<vmem>>, %arg5: memref<8x160xf32, #tpu.memory_space<vmem>>, %arg6: memref<32x64xf32, #tpu.memory_space<vmem>>, %arg7: memref<1x64xf32, #tpu.memory_space<vmem>>, %arg8: memref<64x64xf32, #tpu.memory_space<vmem>>, %arg9: memref<1x64xf32, #tpu.memory_space<vmem>>, %arg10: memref<64x2xf32, #tpu.memory_space<vmem>>, %arg11: memref<1x2xf32, #tpu.memory_space<vmem>>, %arg12: memref<8x2xf32, #tpu.memory_space<vmem>>) attributes {dimension_semantics = [#tpu.dimension_semantics<parallel>], iteration_bounds = array<i64: 1>, scalar_prefetch = 0 : i64, scratch_operands = 0 : i64, tpu.core_type = #tpu.core_type<tc>, window_params = [{transform_indices = @transform_0, window_bounds = array<i64: 8, 32>}, {transform_indices = @transform_1, window_bounds = array<i64: 8, 32>}, {pipeline_mode = #tpu.pipeline_mode<synchronous>, transform_indices = @transform_2, window_bounds = array<i64: 160, 32>}, {pipeline_mode = #tpu.pipeline_mode<synchronous>, transform_indices = @transform_3, window_bounds = array<i64: 160, 8>}, {pipeline_mode = #tpu.pipeline_mode<synchronous>, transform_indices = @transform_4, window_bounds = array<i64: 8, 160>}, {pipeline_mode = #tpu.pipeline_mode<synchronous>, transform_indices = @transform_5, window_bounds = array<i64: 32, 64>}, {pipeline_mode = #tpu.pipeline_mode<synchronous>, transform_indices = @transform_6, window_bounds = array<i64: 1, 64>}, {pipeline_mode = #tpu.pipeline_mode<synchronous>, transform_indices = @transform_7, window_bounds = array<i64: 64, 64>}, {pipeline_mode = #tpu.pipeline_mode<synchronous>, transform_indices = @transform_8, window_bounds = array<i64: 1, 64>}, {pipeline_mode = #tpu.pipeline_mode<synchronous>, transform_indices = @transform_9, window_bounds = array<i64: 64, 2>}, {pipeline_mode = #tpu.pipeline_mode<synchronous>, transform_indices = @transform_10, window_bounds = array<i64: 1, 2>}, {transform_indices = @transform_11, window_bounds = array<i64: 8, 2>}]} {
    %c0 = arith.constant 0 : index
    %c0_0 = arith.constant 0 : index
    %0 = vector.load %arg1[%c0, %c0_0] : memref<8x32xf32, #tpu.memory_space<vmem>>, vector<8x32xf32>
    %c0_1 = arith.constant 0 : index
    %c0_2 = arith.constant 0 : index
    %1 = vector.load %arg2[%c0_1, %c0_2] : memref<8x32xf32, #tpu.memory_space<vmem>>, vector<8x32xf32>
    %2 = math.exp %1 : vector<8x32xf32>
    %c0_3 = arith.constant 0 : index
    %c0_4 = arith.constant 0 : index
    %3 = vector.load %arg3[%c0_3, %c0_4] : memref<160x32xf32, #tpu.memory_space<vmem>>, vector<160x32xf32>
    %c0_5 = arith.constant 0 : index
    %c0_6 = arith.constant 0 : index
    %4 = vector.load %arg4[%c0_5, %c0_6] : memref<160x8xf32, #tpu.memory_space<vmem>>, vector<160x8xf32>
    %c0_7 = arith.constant 0 : index
    %c0_8 = arith.constant 0 : index
    %5 = vector.load %arg5[%c0_7, %c0_8] : memref<8x160xf32, #tpu.memory_space<vmem>>, vector<8x160xf32>
    %cst = arith.constant dense<0.000000e+00> : vector<160x32xf32>
    %6 = tpu.matmul %4, %0, %cst {dimension_numbers = #tpu.dot_dimension_numbers<[1], [0], [0], [1], [0, 0, 1, 1], [], []>} : vector<160x8xf32>, vector<8x32xf32>, vector<160x32xf32> -> vector<160x32xf32>
    %cst_9 = arith.constant dense<0.000000e+00> : vector<160x32xf32>
    %7 = tpu.matmul %4, %2, %cst_9 {dimension_numbers = #tpu.dot_dimension_numbers<[1], [0], [0], [1], [0, 0, 1, 1], [], []>} : vector<160x8xf32>, vector<8x32xf32>, vector<160x32xf32> -> vector<160x32xf32>
    %8 = arith.mulf %7, %3 : vector<160x32xf32>
    %9 = arith.addf %6, %8 : vector<160x32xf32>
    %c0_10 = arith.constant 0 : index
    %c0_11 = arith.constant 0 : index
    %10 = vector.load %arg6[%c0_10, %c0_11] : memref<32x64xf32, #tpu.memory_space<vmem>>, vector<32x64xf32>
    %cst_12 = arith.constant dense<0.000000e+00> : vector<160x64xf32>
    %11 = tpu.matmul %9, %10, %cst_12 {dimension_numbers = #tpu.dot_dimension_numbers<[1], [0], [0], [1], [0, 0, 1, 1], [], []>} : vector<160x32xf32>, vector<32x64xf32>, vector<160x64xf32> -> vector<160x64xf32>
    %c0_13 = arith.constant 0 : index
    %c0_14 = arith.constant 0 : index
    %12 = vector.load %arg7[%c0_13, %c0_14] : memref<1x64xf32, #tpu.memory_space<vmem>>, vector<1x64xf32>
    %13 = vector.broadcast %12 : vector<1x64xf32> to vector<160x64xf32>
    %14 = arith.addf %11, %13 : vector<160x64xf32>
    %cst_15 = arith.constant 0.000000e+00 : f32
    %15 = vector.broadcast %cst_15 : f32 to vector<160x64xf32>
    %16 = arith.maximumf %14, %15 : vector<160x64xf32>
    %cst_16 = arith.constant dense<0.000000e+00> : vector<8x64xf32>
    %17 = tpu.matmul %5, %16, %cst_16 {dimension_numbers = #tpu.dot_dimension_numbers<[1], [0], [0], [1], [0, 0, 1, 1], [], []>} : vector<8x160xf32>, vector<160x64xf32>, vector<8x64xf32> -> vector<8x64xf32>
    %c0_17 = arith.constant 0 : index
    %c0_18 = arith.constant 0 : index
    %18 = vector.load %arg8[%c0_17, %c0_18] : memref<64x64xf32, #tpu.memory_space<vmem>>, vector<64x64xf32>
    %cst_19 = arith.constant dense<0.000000e+00> : vector<8x64xf32>
    %19 = tpu.matmul %17, %18, %cst_19 {dimension_numbers = #tpu.dot_dimension_numbers<[1], [0], [0], [1], [0, 0, 1, 1], [], []>} : vector<8x64xf32>, vector<64x64xf32>, vector<8x64xf32> -> vector<8x64xf32>
    %c0_20 = arith.constant 0 : index
    %c0_21 = arith.constant 0 : index
    %20 = vector.load %arg9[%c0_20, %c0_21] : memref<1x64xf32, #tpu.memory_space<vmem>>, vector<1x64xf32>
    %21 = vector.broadcast %20 : vector<1x64xf32> to vector<8x64xf32>
    %22 = arith.addf %19, %21 : vector<8x64xf32>
    %cst_22 = arith.constant 0.000000e+00 : f32
    %23 = vector.broadcast %cst_22 : f32 to vector<8x64xf32>
    %24 = arith.maximumf %22, %23 : vector<8x64xf32>
    %c0_23 = arith.constant 0 : index
    %c0_24 = arith.constant 0 : index
    %25 = vector.load %arg10[%c0_23, %c0_24] : memref<64x2xf32, #tpu.memory_space<vmem>>, vector<64x2xf32>
    %cst_25 = arith.constant dense<0.000000e+00> : vector<8x2xf32>
    %26 = tpu.matmul %24, %25, %cst_25 {dimension_numbers = #tpu.dot_dimension_numbers<[1], [0], [0], [1], [0, 0, 1, 1], [], []>} : vector<8x64xf32>, vector<64x2xf32>, vector<8x2xf32> -> vector<8x2xf32>
    %c0_26 = arith.constant 0 : index
    %c0_27 = arith.constant 0 : index
    %27 = vector.load %arg11[%c0_26, %c0_27] : memref<1x2xf32, #tpu.memory_space<vmem>>, vector<1x2xf32>
    %28 = vector.broadcast %27 : vector<1x2xf32> to vector<8x2xf32>
    %29 = arith.addf %26, %28 : vector<8x2xf32>
    %c0_28 = arith.constant 0 : index
    %c0_29 = arith.constant 0 : index
    %30 = vector.load %arg12[%c0_28, %c0_29] : memref<8x2xf32, #tpu.memory_space<vmem>>, vector<8x2xf32>
    tpu.vector_store %arg12[%c0_28, %c0_29], %29 {strides = array<i32>} : memref<8x2xf32, #tpu.memory_space<vmem>>, vector<8x2xf32>,
    return
  }
  func.func @transform_0(%arg0: i32) -> (i32, i32) {
    %c0_i32 = arith.constant 0 : i32
    %c0_i32_0 = arith.constant 0 : i32
    return %arg0, %c0_i32 : i32, i32
  }
  func.func @transform_1(%arg0: i32) -> (i32, i32) {
    %c0_i32 = arith.constant 0 : i32
    %c0_i32_0 = arith.constant 0 : i32
    return %arg0, %c0_i32 : i32, i32
  }
  func.func @transform_2(%arg0: i32) -> (i32, i32) {
    %c0_i32 = arith.constant 0 : i32
    %c0_i32_0 = arith.constant 0 : i32
    %c0_i32_1 = arith.constant 0 : i32
    return %c0_i32, %c0_i32_0 : i32, i32
  }
  func.func @transform_3(%arg0: i32) -> (i32, i32) {
    %c0_i32 = arith.constant 0 : i32
    %c0_i32_0 = arith.constant 0 : i32
    %c0_i32_1 = arith.constant 0 : i32
    return %c0_i32, %c0_i32_0 : i32, i32
  }
  func.func @transform_4(%arg0: i32) -> (i32, i32) {
    %c0_i32 = arith.constant 0 : i32
    %c0_i32_0 = arith.constant 0 : i32
    %c0_i32_1 = arith.constant 0 : i32
    return %c0_i32, %c0_i32_0 : i32, i32
  }
  func.func @transform_5(%arg0: i32) -> (i32, i32) {
    %c0_i32 = arith.constant 0 : i32
    %c0_i32_0 = arith.constant 0 : i32
    %c0_i32_1 = arith.constant 0 : i32
    return %c0_i32, %c0_i32_0 : i32, i32
  }
  func.func @transform_6(%arg0: i32) -> (i32, i32) {
    %c0_i32 = arith.constant 0 : i32
    %c0_i32_0 = arith.constant 0 : i32
    %c0_i32_1 = arith.constant 0 : i32
    return %c0_i32, %c0_i32_0 : i32, i32
  }
  func.func @transform_7(%arg0: i32) -> (i32, i32) {
    %c0_i32 = arith.constant 0 : i32
    %c0_i32_0 = arith.constant 0 : i32
    %c0_i32_1 = arith.constant 0 : i32
    return %c0_i32, %c0_i32_0 : i32, i32
  }
  func.func @transform_8(%arg0: i32) -> (i32, i32) {
    %c0_i32 = arith.constant 0 : i32
    %c0_i32_0 = arith.constant 0 : i32
    %c0_i32_1 = arith.constant 0 : i32
    return %c0_i32, %c0_i32_0 : i32, i32
  }
  func.func @transform_9(%arg0: i32) -> (i32, i32) {
    %c0_i32 = arith.constant 0 : i32
    %c0_i32_0 = arith.constant 0 : i32
    %c0_i32_1 = arith.constant 0 : i32
    return %c0_i32, %c0_i32_0 : i32, i32
  }
  func.func @transform_10(%arg0: i32) -> (i32, i32) {
    %c0_i32 = arith.constant 0 : i32
    %c0_i32_0 = arith.constant 0 : i32
    %c0_i32_1 = arith.constant 0 : i32
    return %c0_i32, %c0_i32_0 : i32, i32
  }
  func.func @transform_11(%arg0: i32) -> (i32, i32) {
    %c0_i32 = arith.constant 0 : i32
    %c0_i32_0 = arith.constant 0 : i32
    return %arg0, %c0_i32 : i32, i32
  }
}

</mosaic_0001>

<bundles_post_ra>
// kernel: tpu_custom_call.1
= control target key start
LH: loop header
LB: loop body
LE: loop exit
PB: predicated region body
PF: predicated region fallthrough
CT: control target
= control target key end

     0   :  { %16 = vsyncpa [#allocation3], 0  ;;  %s2151_s0 = inlined_call_operand.hbm [shape: f32[8,32], index: 0, kind: input, shape index: {}]   ;;  %s2152_s1 = inlined_call_operand.hbm [shape: f32[8,32], index: 1, kind: input, shape index: {}]   ;;  %s2153_s2 = inlined_call_operand.hbm [shape: f32[160,32], index: 2, kind: input, shape index: {}]   ;;  %s2154_s3 = inlined_call_operand.hbm [shape: f32[160,8], index: 3, kind: input, shape index: {}]   ;;  %s2155_s4 = inlined_call_operand.hbm [shape: f32[8,160], index: 4, kind: input, shape index: {}]   ;;  %s2156_s5 = inlined_call_operand.hbm [shape: f32[32,64], index: 5, kind: input, shape index: {}]   ;;  %s2157_s6 = inlined_call_operand.hbm [shape: f32[1,64], index: 6, kind: input, shape index: {}]   ;;  %s2158_s7 = inlined_call_operand.hbm [shape: f32[64,64], index: 7, kind: input, shape index: {}]   ;;  %s2159_s8 = inlined_call_operand.hbm [shape: f32[1,64], index: 8, kind: input, shape index: {}]   ;;  %s2160_s9 = inlined_call_operand.hbm [shape: f32[64,2], index: 9, kind: input, shape index: {}]   ;;  %s2161_s10 = inlined_call_operand.hbm [shape: f32[1,2], index: 10, kind: input, shape index: {}]   ;;  %s2162_s11 = inlined_call_operand.hbm [shape: f32[8,2], index: 11, kind: output, shape index: {}]  }
   0x1   :  { %17 = vsyncpa [#allocation6], 0 }
   0x2   :  { %18 = vsyncpa [#allocation9], 0 }
   0x3   :  { %19 = vsyncpa [#allocation12], 0 }
   0x4   :  { %20 = vsyncpa [#allocation15], 0 }
   0x5   :  { %21 = vsyncpa [#allocation18], 0 }
   0x6   :  { %22 = vsyncpa [#allocation4], 0  ;;  %s1812_s17 = smov [#allocation5]   ;;  %s1534_s21 = scalar_lea.hbm %s2152_s1, 128 }
   0x7   :  { %s39_s18 = sshll.u32 %s1812_s17, 4  ;;  %p1535_p0 = scmp.ne.s32.totalorder %s2152_s1, %s1534_s21  ;;  %s40_s18 = int_to_ptr.vmem [resolvable:$true] %s39_s18 }
   0x8   :  { %p1538_p1 = scmp.lt.u32.totalorder %s1534_s21, %s2152_s1 }
   0xa   :  { %p1540_p2 = pnand %p1538_p1, %p1535_p0 }
   0xc   :  { %1543 = shalt.err (!%p1540_p2)
}
   0xd   :  { %s1544_s26 = scalar_lea.vmem %s40_s18, 128  ;;  %p1549_p4 = scmp.lt.s32.totalorder %s40_s18, %s40_s18 }
   0xe   :  { %p1545_p3 = scmp.ne.s32.totalorder %s40_s18, %s1544_s26  ;;  %p1550_p5 = scmp.lt.s32.totalorder %s1544_s26, %s1544_s26 }
  0x10   :  { %p1551_p6 = por %p1550_p5, %p1549_p4 }
  0x12   :  { %p1552_p7 = pnand %p1551_p6, %p1545_p3 }
  0x14   :  { %1555 = shalt.err (!%p1552_p7)
}
  0x15   :  { %42 = dma.hbm_to_vmem [thread:$0]  %s2152_s1, 128, %s40_s18, [#allocation6]  }
  0x16   :  { %s1813_s29 = smov [#allocation8]   ;;  %s1814_s12 = smov [#allocation11]  }
  0x17   :  { %s60_s30 = sshll.u32 %s1813_s29, 4  ;;  %s82_s13 = sshll.u32 %s1814_s12, 4  ;;  %s61_s30 = int_to_ptr.vmem [resolvable:$true] %s60_s30  ;;  %s83_s13 = int_to_ptr.vmem [resolvable:$true] %s82_s13 }
  0x18   :  { %s1556_s16 = scalar_lea.hbm %s2154_s3, 2560 }
  0x19   :  { %p1557_p8 = scmp.ne.s32.totalorder %s2154_s3, %s1556_s16  ;;  %p1560_p9 = scmp.lt.u32.totalorder %s1556_s16, %s2154_s3 }
  0x1b   :  { %p1562_p10 = pnand %p1560_p9, %p1557_p8 }
  0x1d   :  { %1565 = shalt.err (!%p1562_p10)
}
  0x1e   :  { %s1566_s1 = scalar_lea.vmem %s61_s30, 2560  ;;  %p1571_p12 = scmp.lt.s32.totalorder %s61_s30, %s61_s30 }
  0x1f   :  { %p1567_p11 = scmp.ne.s32.totalorder %s61_s30, %s1566_s1  ;;  %p1572_p13 = scmp.lt.s32.totalorder %s1566_s1, %s1566_s1 }
  0x21   :  { %p1573_p0 = por %p1572_p13, %p1571_p12 }
  0x23   :  { %p1574_p1 = pnand %p1573_p0, %p1567_p11 }
  0x25   :  { %1577 = shalt.err (!%p1574_p1)
}
  0x26   :  { %s1815_s18 = smov 128   ;;  %s1816_s22 = smov 8  }
  0x27   :  { %66 = dma.hbm_to_vmem [thread:$0]  %s2154_s3, 2560, %s61_s30, [#allocation9], %s1815_s18, %s1815_s18, %s1816_s22  }
  0x28   :  { %s1578_s27 = scalar_lea.hbm %s2156_s5, 512 }
  0x29   :  { %p1579_p2 = scmp.ne.s32.totalorder %s2156_s5, %s1578_s27  ;;  %p1582_p3 = scmp.lt.u32.totalorder %s1578_s27, %s2156_s5 }
  0x2b   :  { %p1584_p4 = pnand %p1582_p3, %p1579_p2 }
  0x2d   :  { %1587 = shalt.err (!%p1584_p4)
}
  0x2e   :  { %s1588_s15 = scalar_lea.vmem %s83_s13, 512  ;;  %p1593_p6 = scmp.lt.s32.totalorder %s83_s13, %s83_s13 }
  0x2f   :  { %p1589_p5 = scmp.ne.s32.totalorder %s83_s13, %s1588_s15  ;;  %p1594_p7 = scmp.lt.s32.totalorder %s1588_s15, %s1588_s15 }
  0x31   :  { %p1595_p8 = por %p1594_p7, %p1593_p6 }
  0x33   :  { %p1596_p9 = pnand %p1595_p8, %p1589_p5 }
  0x35   :  { %1599 = shalt.err (!%p1596_p9)
}
  0x36   :  { %88 = dma.hbm_to_vmem [thread:$0]  %s2156_s5, 512, %s83_s13, [#allocation12], %s1815_s18, %s1815_s18, %s1816_s22  }
  0x37   :  { %s1817_s16 = smov [#allocation14]   ;;  %s1818_s19 = smov [#allocation17]  }
  0x38   :  { %s104_s17 = sshll.u32 %s1817_s16, 4  ;;  %s126_s20 = sshll.u32 %s1818_s19, 4  ;;  %s105_s17 = int_to_ptr.vmem [resolvable:$true] %s104_s17  ;;  %s127_s20 = int_to_ptr.vmem [resolvable:$true] %s126_s20 }
  0x39   :  { %s1600_s23 = scalar_lea.hbm %s2158_s7, 1024 }
  0x3a   :  { %p1601_p10 = scmp.ne.s32.totalorder %s2158_s7, %s1600_s23  ;;  %p1604_p11 = scmp.lt.u32.totalorder %s1600_s23, %s2158_s7 }
  0x3c   :  { %p1606_p12 = pnand %p1604_p11, %p1601_p10 }
  0x3e   :  { %1609 = shalt.err (!%p1606_p12)
}
  0x3f   :  { %s1610_s5 = scalar_lea.vmem %s105_s17, 1024  ;;  %p1615_p0 = scmp.lt.s32.totalorder %s105_s17, %s105_s17 }
  0x40   :  { %p1611_p13 = scmp.ne.s32.totalorder %s105_s17, %s1610_s5  ;;  %p1616_p1 = scmp.lt.s32.totalorder %s1610_s5, %s1610_s5 }
  0x42   :  { %p1617_p2 = por %p1616_p1, %p1615_p0 }
  0x44   :  { %p1618_p3 = pnand %p1617_p2, %p1611_p13 }
  0x46   :  { %1621 = shalt.err (!%p1618_p3)
}
  0x47   :  { %110 = dma.hbm_to_vmem [thread:$0]  %s2158_s7, 1024, %s105_s17, [#allocation15], %s1815_s18, %s1815_s18, %s1816_s22  }
  0x48   :  { %s1622_s14 = scalar_lea.hbm %s2160_s9, 1024 }
  0x49   :  { %p1623_p4 = scmp.ne.s32.totalorder %s2160_s9, %s1622_s14  ;;  %p1626_p5 = scmp.lt.u32.totalorder %s1622_s14, %s2160_s9 }
  0x4b   :  { %p1628_p6 = pnand %p1626_p5, %p1623_p4 }
  0x4d   :  { %1631 = shalt.err (!%p1628_p6)
}
  0x4e   :  { %s1632_s19 = scalar_lea.vmem %s127_s20, 1024  ;;  %p1637_p8 = scmp.lt.s32.totalorder %s127_s20, %s127_s20 }
  0x4f   :  { %p1633_p7 = scmp.ne.s32.totalorder %s127_s20, %s1632_s19  ;;  %p1638_p9 = scmp.lt.s32.totalorder %s1632_s19, %s1632_s19 }
  0x51   :  { %p1639_p10 = por %p1638_p9, %p1637_p8 }
  0x53   :  { %p1640_p11 = pnand %p1639_p10, %p1633_p7 }
  0x55   :  { %1643 = shalt.err (!%p1640_p11)
}
  0x56   :  { %132 = dma.hbm_to_vmem [thread:$0]  %s2160_s9, 1024, %s127_s20, [#allocation18], %s1815_s18, %s1815_s18, %s1816_s22  }
  0x57   :  { %s1819_s21 = smov [#allocation2]   ;;  %s1820_s23 = smov [#allocation7]  }
  0x58   :  { %s29_s1 = sshll.u32 %s1819_s21, 4  ;;  %s48_s24 = sshll.u32 %s1820_s23, 4  ;;  %s30_s1 = int_to_ptr.vmem [resolvable:$true] %s29_s1  ;;  %s49_s24 = int_to_ptr.vmem [resolvable:$true] %s48_s24 }
  0x59   :  { %s1644_s27 = scalar_lea.hbm %s2151_s0, 128 }
  0x5a   :  { %p1645_p12 = scmp.ne.s32.totalorder %s2151_s0, %s1644_s27  ;;  %p1648_p13 = scmp.lt.u32.totalorder %s1644_s27, %s2151_s0 }
  0x5c   :  { %p1650_p0 = pnand %p1648_p13, %p1645_p12 }
  0x5e   :  { %1653 = shalt.err (!%p1650_p0)
}
  0x5f   :  { %s1654_s9 = scalar_lea.vmem %s30_s1, 128  ;;  %p1659_p2 = scmp.lt.s32.totalorder %s30_s1, %s30_s1 }
  0x60   :  { %p1655_p1 = scmp.ne.s32.totalorder %s30_s1, %s1654_s9  ;;  %p1660_p3 = scmp.lt.s32.totalorder %s1654_s9, %s1654_s9 }
  0x62   :  { %p1661_p4 = por %p1660_p3, %p1659_p2 }
  0x64   :  { %p1662_p5 = pnand %p1661_p4, %p1655_p1 }
  0x66   :  { %1665 = shalt.err (!%p1662_p5)
}
  0x67   :  { %32 = dma.hbm_to_vmem [thread:$0]  %s2151_s0, 128, %s30_s1, [#allocation3]  }
  0x68   :  { %s1666_s3 = scalar_lea.hbm %s2153_s2, 2560 }
  0x69   :  { %p1667_p6 = scmp.ne.s32.totalorder %s2153_s2, %s1666_s3  ;;  %p1670_p7 = scmp.lt.u32.totalorder %s1666_s3, %s2153_s2 }
  0x6b   :  { %p1672_p8 = pnand %p1670_p7, %p1667_p6 }
  0x6d   :  { %1675 = shalt.err (!%p1672_p8)
}
  0x6e   :  { %s1676_s17 = scalar_lea.vmem %s49_s24, 2560  ;;  %p1681_p10 = scmp.lt.s32.totalorder %s49_s24, %s49_s24 }
  0x6f   :  { %p1677_p9 = scmp.ne.s32.totalorder %s49_s24, %s1676_s17  ;;  %p1682_p11 = scmp.lt.s32.totalorder %s1676_s17, %s1676_s17 }
  0x71   :  { %p1683_p12 = por %p1682_p11, %p1681_p10 }
  0x73   :  { %p1684_p13 = pnand %p1683_p12, %p1677_p9 }
  0x75   :  { %1687 = shalt.err (!%p1684_p13)
}
  0x76   :  { %54 = dma.hbm_to_vmem [thread:$0]  %s2153_s2, 2560, %s49_s24, [#allocation6], %s1815_s18, %s1815_s18, %s1816_s22  }
  0x77   :  { %s1821_s1 = smov [#allocation10]   ;;  %s1822_s25 = smov [#allocation13]  }
  0x78   :  { %s73_s23 = sshll.u32 %s1821_s1, 4  ;;  %s95_s26 = sshll.u32 %s1822_s25, 4  ;;  %s74_s23 = int_to_ptr.vmem [resolvable:$true] %s73_s23  ;;  %s96_s26 = int_to_ptr.vmem [resolvable:$true] %s95_s26 }
  0x79   :  { %s1688_s13 = scalar_lea.hbm %s2155_s4, 256 }
  0x7a   :  { %p1689_p0 = scmp.ne.s32.totalorder %s2155_s4, %s1688_s13  ;;  %p1692_p1 = scmp.lt.u32.totalorder %s1688_s13, %s2155_s4 }
  0x7c   :  { %p1694_p2 = pnand %p1692_p1, %p1689_p0 }
  0x7e   :  { %1697 = shalt.err (!%p1694_p2)
}
  0x7f   :  { %s1698_s2 = scalar_lea.vmem %s74_s23, 256  ;;  %p1703_p4 = scmp.lt.s32.totalorder %s74_s23, %s74_s23 }
  0x80   :  { %p1699_p3 = scmp.ne.s32.totalorder %s74_s23, %s1698_s2  ;;  %p1704_p5 = scmp.lt.s32.totalorder %s1698_s2, %s1698_s2 }
  0x82   :  { %p1705_p6 = por %p1704_p5, %p1703_p4 }
  0x84   :  { %p1706_p7 = pnand %p1705_p6, %p1699_p3 }
  0x86   :  { %1709 = shalt.err (!%p1706_p7)
}
  0x87   :  { %76 = dma.hbm_to_vmem [thread:$0]  %s2155_s4, 256, %s74_s23, [#allocation9]  }
  0x88   :  { %s1710_s14 = scalar_lea.hbm %s2157_s6, 16 }
  0x89   :  { %p1711_p8 = scmp.ne.s32.totalorder %s2157_s6, %s1710_s14  ;;  %p1714_p9 = scmp.lt.u32.totalorder %s1710_s14, %s2157_s6 }
  0x8b   :  { %p1716_p10 = pnand %p1714_p9, %p1711_p8 }
  0x8d   :  { %1719 = shalt.err (!%p1716_p10)
}
  0x8e   :  { %s1720_s19 = scalar_lea.vmem %s96_s26, 16  ;;  %s1724_s7 = scalar_lea.vmem %s96_s26, 32 }
  0x8f   :  { %p1721_p11 = scmp.ne.s32.totalorder %s96_s26, %s1720_s19  ;;  %p1725_p12 = scmp.lt.s32.totalorder %s96_s26, %s96_s26 }
  0x90   :  { %p1726_p13 = scmp.lt.s32.totalorder %s1724_s7, %s1720_s19 }
  0x92   :  { %p1727_p0 = por %p1726_p13, %p1725_p12 }
  0x94   :  { %p1728_p1 = pnand %p1727_p0, %p1721_p11 }
  0x96   :  { %1731 = shalt.err (!%p1728_p1)
}
  0x97   :  { %98 = dma.hbm_to_vmem [thread:$0]  %s2157_s6, 16, %s96_s26, [#allocation12]  }
  0x98   :  { %s1823_s0 = smov [#allocation16]   ;;  %s1824_s1 = smov [#allocation19]  }
  0x99   :  { %s117_s21 = sshll.u32 %s1823_s0, 4  ;;  %s139_s23 = sshll.u32 %s1824_s1, 4  ;;  %s118_s21 = int_to_ptr.vmem [resolvable:$true] %s117_s21  ;;  %s140_s23 = int_to_ptr.vmem [resolvable:$true] %s139_s23 }
  0x9a   :  { %s1732_s5 = scalar_lea.hbm %s2159_s8, 16 }
  0x9b   :  { %p1733_p2 = scmp.ne.s32.totalorder %s2159_s8, %s1732_s5  ;;  %p1736_p3 = scmp.lt.u32.totalorder %s1732_s5, %s2159_s8 }
  0x9d   :  { %p1738_p4 = pnand %p1736_p3, %p1733_p2 }
  0x9f   :  { %1741 = shalt.err (!%p1738_p4)
}
  0xa0   :  { %s1742_s6 = scalar_lea.vmem %s118_s21, 16  ;;  %s1746_s26 = scalar_lea.vmem %s118_s21, 32 }
  0xa1   :  { %p1743_p5 = scmp.ne.s32.totalorder %s118_s21, %s1742_s6  ;;  %p1747_p6 = scmp.lt.s32.totalorder %s118_s21, %s118_s21 }
  0xa2   :  { %p1748_p7 = scmp.lt.s32.totalorder %s1746_s26, %s1742_s6 }
  0xa4   :  { %p1749_p8 = por %p1748_p7, %p1747_p6 }
  0xa6   :  { %p1750_p9 = pnand %p1749_p8, %p1743_p5 }
  0xa8   :  { %1753 = shalt.err (!%p1750_p9)
}
  0xa9   :  { %120 = dma.hbm_to_vmem [thread:$0]  %s2159_s8, 16, %s118_s21, [#allocation15]  }
  0xaa   :  { %s1754_s24 = scalar_lea.hbm %s2161_s10, 16 }
  0xab   :  { %p1755_p10 = scmp.ne.s32.totalorder %s2161_s10, %s1754_s24  ;;  %p1758_p11 = scmp.lt.u32.totalorder %s1754_s24, %s2161_s10 }
  0xad   :  { %p1760_p12 = pnand %p1758_p11, %p1755_p10 }
  0xaf   :  { %1763 = shalt.err (!%p1760_p12)
}
  0xb0   :  { %s1764_s30 = scalar_lea.vmem %s140_s23, 16  ;;  %s1768_s16 = scalar_lea.vmem %s140_s23, 32 }
  0xb1   :  { %p1765_p13 = scmp.ne.s32.totalorder %s140_s23, %s1764_s30  ;;  %p1769_p0 = scmp.lt.s32.totalorder %s140_s23, %s140_s23 }
  0xb2   :  { %p1770_p1 = scmp.lt.s32.totalorder %s1768_s16, %s1764_s30 }
  0xb4   :  { %p1771_p2 = por %p1770_p1, %p1769_p0 }
  0xb6   :  { %p1772_p3 = pnand %p1771_p2, %p1765_p13 }
  0xb8   :  { %1775 = shalt.err (!%p1772_p3)
}
  0xb9   :  { %142 = dma.hbm_to_vmem [thread:$0]  %s2161_s10, 16, %s140_s23, [#allocation18]  }
  0xba   :  { %1798 = dma.done.wait [#allocation3], 128  }
  0xbb   :  { %1799 = vsyncadd [#allocation3], 4294967168 }
  0xbc   :  { %1800 = dma.done.wait [#allocation6], 2688  }
  0xbd   :  { %1801 = vsyncadd [#allocation6], 4294964608 }
  0xbe   :  { %1802 = dma.done.wait [#allocation9], 2816  }
  0xbf   :  { %1803 = vsyncadd [#allocation9], 4294964480 }
  0xc0   :  { %1804 = dma.done.wait [#allocation12], 528  }
  0xc1   :  { %1805 = vsyncadd [#allocation12], 4294966768 }
  0xc2   :  { %1806 = dma.done.wait [#allocation15], 1040  }
  0xc3   :  { %1807 = vsyncadd [#allocation15], 4294966256 }
  0xc4   :  { %1808 = dma.done.wait [#allocation18], 1040  }
  0xc5   :  { %1809 = vsyncadd [#allocation18], 4294966256  ;;  %vm222_vm0 = vcmask 64512   ;;  %v177_v0 = vld [vmem:[#allocation5] sm:$0xff]  ;;  %v200_v1 = vld [vmem:[#allocation8] sm:$0xff]  ;;  %vm644_vm1 = vcmask 261120  }
  0xc6   :  { %v176_v2 = vld [vmem:[#allocation2] sm:$0xff]  ;;  %v178_v3 = vmul.f32 1.442695, %v177_v0  ;;  %1315 = vmatprep.mubr.msk.f32.mxu0 %vm222_vm0, %v200_v1  ;;  %v201_v4 = vld [vmem:[#allocation8 + $0x8] sm:$0xff]  ;;  %1347 = vmatprep.mubr.msk.f32.mxu1 %vm222_vm0, %v200_v1  ;;  %v203_v6 = vld [vmem:[#allocation8 + $0x18] sm:$0xff]  ;;  %vm1826_vm2 = vmmov 0  }
  0xc7   :  { %1345 = vmatprep.subr.mxu1 %v176_v2  ;;  %v202_v5 = vld [vmem:[#allocation8 + $0x10] sm:$0xff]  ;;  %v204_v7 = vld [vmem:[#allocation8 + $0x20] sm:$0xff]  ;;  %v205_v8 = vld [vmem:[#allocation8 + $0x28] sm:$0xff]  ;;  %vm978_vm3 = vcmask 523264   ;;  %s1828_s10 = smov [#allocation20]   ;;  %vm1141_vm4 = vcmask 15360  }
  0xc8   :  { %1346 = vmatpush3.msra.mxu1 %v176_v2  ;;  %1532 = vpow2.f32 %v178_v3  ;;  %v206_v9 = vld [vmem:[#allocation8 + $0x30] sm:$0xff]  ;;  %v634_v11 = vld [vmem:[#allocation11 + $0x8] sm:$0xff]  ;;  %v635_v13 = vld [vmem:[#allocation11 + $0x10] sm:$0xff]  ;;  %s1149_s7 = sshll.u32 %s1828_s10, 4  ;;  %s1150_s7 = int_to_ptr.vmem [resolvable:$true] %s1149_s7 }
  0xc9   :  { %1348 = vmatmul.mubr.msk.f32.vlgmr.msra.gmra.mrb[0].mxu1 %vm222_vm0, %v201_v4  ;;  %v633_v10 = vld [vmem:[#allocation11] sm:$0xff]  ;;  %v207_v12 = vld [vmem:[#allocation8 + $0x38] sm:$0xff]  ;;  %v636_v14 = vld [vmem:[#allocation11 + $0x18] sm:$0xff]  ;;  %s1776_s4 = scalar_lea.vmem %s1150_s7, 128  ;;  %p1781_p5 = scmp.lt.s32.totalorder %s1150_s7, %s1150_s7 }
  0xca   :  { %1350 = vmatprep.mubr.msk.f32.mxu1 %vm222_vm0, %v202_v5  ;;  %v208_v16 = vld [vmem:[#allocation8 + $0x40] sm:$0xff]  ;;  %v1453_v17 = vpack.c.bf16 %v634_v11, %v633_v10  ;;  %v1457_v18 = vpack.c.bf16 %v636_v14, %v635_v13  ;;  %v209_v19 = vld [vmem:[#allocation8 + $0x48] sm:$0xff]  ;;  %v210_v20 = vld [vmem:[#allocation8 + $0x50] sm:$0xff]  ;;  %p1777_p4 = scmp.ne.s32.totalorder %s1150_s7, %s1776_s4  ;;  %p1782_p6 = scmp.lt.s32.totalorder %s1776_s4, %s1776_s4 }
  0xcb   :  { %v211_v21 = vld [vmem:[#allocation8 + $0x58] sm:$0xff]  ;;  %v212_v22 = vld [vmem:[#allocation8 + $0x60] sm:$0xff]  ;;  %v213_v23 = vld [vmem:[#allocation8 + $0x68] sm:$0xff] }
  0xcc   :  { %v214_v24 = vld [vmem:[#allocation8 + $0x70] sm:$0xff]  ;;  %v215_v25 = vld [vmem:[#allocation8 + $0x78] sm:$0xff]  ;;  %v216_v26 = vld [vmem:[#allocation8 + $0x80] sm:$0xff]  ;;  %p1783_p7 = por %p1782_p6, %p1781_p5 }
  0xcd   :  { %1351 = vmatmul.mubr.msk.f32.gmra.mrb[2].mxu1 %vm222_vm0, %v203_v6  ;;  %v217_v27 = vld [vmem:[#allocation8 + $0x88] sm:$0xff]  ;;  %v218_v28 = vld [vmem:[#allocation8 + $0x90] sm:$0xff]  ;;  %v219_v29 = vld [vmem:[#allocation8 + $0x98] sm:$0xff] }
  0xce   :  { %1353 = vmatprep.mubr.msk.f32.mxu1 %vm222_vm0, %v204_v7  ;;  %v181_v36 = vld [vmem:[#allocation7 + $0x8] sm:$0xff]  ;;  %v180_v37 = vld [vmem:[#allocation7] sm:$0xff]  ;;  %v183_v44 = vld [vmem:[#allocation7 + $0x18] sm:$0xff]  ;;  %p1784_p8 = pnand %p1783_p7, %p1777_p4 }
  0xcf   :  { %v182_v46 = vld [vmem:[#allocation7 + $0x10] sm:$0xff]  ;;  %v185_v54 = vld [vmem:[#allocation7 + $0x28] sm:$0xff]  ;;  %v184_v56 = vld [vmem:[#allocation7 + $0x20] sm:$0xff] }
  0xd0   :  { %v187_v0 = vld [vmem:[#allocation7 + $0x38] sm:$0xff]  ;;  %v186_v2 = vld [vmem:[#allocation7 + $0x30] sm:$0xff]  ;;  %v189_v10 = vld [vmem:[#allocation7 + $0x48] sm:$0xff] }
  0xd1   :  { %1354 = vmatmul.mubr.msk.f32.gmra.mrb[4].mxu1 %vm222_vm0, %v205_v8 }
  0xd2   :  { %1356 = vmatprep.mubr.msk.f32.mxu1 %vm222_vm0, %v206_v9  ;;  %v1533_v15 = vpop.eup %1532 }
  0xd3   :  { %1313 = vmatprep.subr.mxu0 %v1533_v15 }
  0xd4   :  { %1314 = vmatpush3.msra.mxu0 %v1533_v15 }
  0xd5   :  { %1357 = vmatmul.mubr.msk.f32.gmra.mrb[6].mxu1 %vm222_vm0, %v207_v12  ;;  %1316 = vmatmul.mubr.msk.f32.vlgmr.msra.gmra.mrb[0].mxu0 %vm222_vm0, %v201_v4 }
  0xd6   :  { %1359 = vmatprep.mubr.msk.f32.mxu1 %vm222_vm0, %v208_v16  ;;  %1318 = vmatprep.mubr.msk.f32.mxu0 %vm222_vm0, %v202_v5 }
  0xd7   :  { %1454 = vmatprep.subr.bf16.mxu0 %v1453_v17 }
  0xd8   :  { %1456 = vmatpush3.bf16.msra.mxu0 %v1453_v17 }
  0xd9   :  { %1360 = vmatmul.mubr.msk.f32.gmra.mrb[8].mxu1 %vm222_vm0, %v209_v19  ;;  %1458 = vmatprep.subr.bf16.mxu0 %v1457_v18 }
  0xda   :  { %1319 = vmatmul.mubr.msk.f32.gmra.mrb[2].mxu0 %vm222_vm0, %v203_v6  ;;  %1362 = vmatprep.mubr.msk.f32.mxu1 %vm222_vm0, %v210_v20 }
  0xdb   :  { %1321 = vmatprep.mubr.msk.f32.mxu0 %vm222_vm0, %v204_v7 }
  0xdc   :  { %1460 = vmatpush3.bf16.msra.mxu0 %v1457_v18 }
  0xdd   :  { %1363 = vmatmul.mubr.msk.f32.gmra.mrb[10].mxu1 %vm222_vm0, %v211_v21 }
  0xde   :  { %1322 = vmatmul.mubr.msk.f32.gmra.mrb[4].mxu0 %vm222_vm0, %v205_v8  ;;  %1365 = vmatprep.mubr.msk.f32.mxu1 %vm222_vm0, %v212_v22 }
  0xdf   :  { %1324 = vmatprep.mubr.msk.f32.mxu0 %vm222_vm0, %v206_v9 }
  0xe1   :  { %1366 = vmatmul.mubr.msk.f32.gmra.mrb[12].mxu1 %vm222_vm0, %v213_v23 }
  0xe2   :  { %1325 = vmatmul.mubr.msk.f32.gmra.mrb[6].mxu0 %vm222_vm0, %v207_v12  ;;  %1368 = vmatprep.mubr.msk.f32.mxu1 %vm222_vm0, %v214_v24  ;;  %v188_v12 = vld [vmem:[#allocation7 + $0x40] sm:$0xff] }
  0xe3   :  { %1327 = vmatprep.mubr.msk.f32.mxu0 %vm222_vm0, %v208_v16 }
  0xe5   :  { %1369 = vmatmul.mubr.msk.f32.gmra.mrb[14].mxu1 %vm222_vm0, %v215_v25 }
  0xe6   :  { %1328 = vmatmul.mubr.msk.f32.gmra.mrb[8].mxu0 %vm222_vm0, %v209_v19  ;;  %1371 = vmatprep.mubr.msk.f32.mxu1 %vm222_vm0, %v216_v26 }
  0xe7   :  { %1330 = vmatprep.mubr.msk.f32.mxu0 %vm222_vm0, %v210_v20  ;;  %v191_v20 = vld [vmem:[#allocation7 + $0x58] sm:$0xff] }
  0xe9   :  { %1372 = vmatmul.mubr.msk.f32.gmra.mrb[16].mxu1 %vm222_vm0, %v217_v27 }
  0xea   :  { %1331 = vmatmul.mubr.msk.f32.gmra.mrb[10].mxu0 %vm222_vm0, %v211_v21  ;;  %1374 = vmatprep.mubr.msk.f32.mxu1 %vm222_vm0, %v218_v28 }
  0xeb   :  { %1333 = vmatprep.mubr.msk.f32.mxu0 %vm222_vm0, %v212_v22  ;;  %v190_v22 = vld [vmem:[#allocation7 + $0x50] sm:$0xff] }
  0xed   :  { %1375 = vmatmul.mubr.msk.f32.gmra.mrb[18].mxu1 %vm222_vm0, %v219_v29 }
  0xee   :  { %1334 = vmatmul.mubr.msk.f32.gmra.mrb[12].mxu0 %vm222_vm0, %v213_v23 }
  0xef   :  { %1336 = vmatprep.mubr.msk.f32.mxu0 %vm222_vm0, %v214_v24 }
  0xf2   :  { %1337 = vmatmul.mubr.msk.f32.gmra.mrb[14].mxu0 %vm222_vm0, %v215_v25 }
  0xf3   :  { %1339 = vmatprep.mubr.msk.f32.mxu0 %vm222_vm0, %v216_v26 }
  0xf6   :  { %1340 = vmatmul.mubr.msk.f32.gmra.mrb[16].mxu0 %vm222_vm0, %v217_v27 }
  0xf7   :  { %1342 = vmatprep.mubr.msk.f32.mxu0 %vm222_vm0, %v218_v28 }
  0xfa   :  { %1343 = vmatmul.mubr.msk.f32.gmra.mrb[18].mxu0 %vm222_vm0, %v219_v29 }
 0x19c   :  { %v1349_v30 = vpop.f32.mrb[0].mxu1 }
 0x19d   :  { %v534_v31 = vpop.f32.mrb[1].mxu1 }
 0x1a0   :  { %v1352_v32 = vpop.f32.mrb[2].mxu1 }
 0x1a1   :  { %v544_v33 = vpop.f32.mrb[3].mxu1 }
 0x1a4   :  { %v1355_v34 = vpop.f32.mrb[4].mxu1 }
 0x1a5   :  { %v554_v35 = vpop.f32.mrb[5].mxu1 }
 0x1a8   :  { %v1358_v38 = vpop.f32.mrb[6].mxu1  ;;  %v1317_v39 = vpop.f32.mrb[0].mxu0 }
 0x1a9   :  { %v564_v40 = vpop.f32.mrb[7].mxu1  ;;  %v449_v41 = vmul.f32 %v1317_v39, %v181_v36  ;;  %v349_v42 = vpop.f32.mrb[1].mxu0 }
 0x1aa   :  { %v448_v43 = vmul.f32 %v349_v42, %v180_v37  ;;  %v194_v42 = vld [vmem:[#allocation7 + $0x70] sm:$0xff] }
 0x1ab   :  { %v540_v45 = vadd.f32 %v1349_v30, %v449_v41  ;;  %v193_v30 = vld [vmem:[#allocation7 + $0x68] sm:$0xff] }
 0x1ac   :  { %v1361_v47 = vpop.f32.mrb[8].mxu1  ;;  %v535_v48 = vadd.f32 %v534_v31, %v448_v43 }
 0x1ad   :  { %v1320_v49 = vpop.f32.mrb[2].mxu0  ;;  %v574_v50 = vpop.f32.mrb[9].mxu1 }
 0x1ae   :  { %v451_v51 = vmul.f32 %v1320_v49, %v183_v44  ;;  %v359_v52 = vpop.f32.mrb[3].mxu0  ;;  %1385 = vmatprep.mubr.msk.f32.mxu0 %vm644_vm1, %v535_v48  ;;  %v197_v48 = vld [vmem:[#allocation7 + $0x88] sm:$0xff] }
 0x1af   :  { %v450_v53 = vmul.f32 %v359_v52, %v182_v46  ;;  %1386 = vmatmul.mubr.msk.f32.vlgmr.msra.gmra.mrb[20].mxu0 %vm644_vm1, %v540_v45 }
 0x1b0   :  { %v550_v55 = vadd.f32 %v1352_v32, %v451_v51  ;;  %v1364_v57 = vpop.f32.mrb[10].mxu1  ;;  %v192_v32 = vld [vmem:[#allocation7 + $0x60] sm:$0xff] }
 0x1b1   :  { %v545_v58 = vadd.f32 %v544_v33, %v450_v53  ;;  %v1323_v59 = vpop.f32.mrb[4].mxu0  ;;  %v584_v60 = vpop.f32.mrb[11].mxu1 }
 0x1b2   :  { %v453_v61 = vmul.f32 %v1323_v59, %v185_v54  ;;  %v369_v62 = vpop.f32.mrb[5].mxu0 }
 0x1b3   :  { %v452_v63 = vmul.f32 %v369_v62, %v184_v56  ;;  %1388 = vmatprep.mubr.msk.f32.mxu0 %vm644_vm1, %v545_v58  ;;  %v199_v56 = vld [vmem:[#allocation7 + $0x98] sm:$0xff]  ;;  %v198_v58 = vld [vmem:[#allocation7 + $0x90] sm:$0xff] }
 0x1b4   :  { %v560_v1 = vadd.f32 %v1355_v34, %v453_v61  ;;  %1389 = vmatmul.mubr.msk.f32.gmra.mrb[22].mxu0 %vm644_vm1, %v550_v55  ;;  %v1367_v3 = vpop.f32.mrb[12].mxu1 }
 0x1b5   :  { %v555_v4 = vadd.f32 %v554_v35, %v452_v63  ;;  %v1326_v5 = vpop.f32.mrb[6].mxu0  ;;  %v594_v6 = vpop.f32.mrb[13].mxu1 }
 0x1b6   :  { %v455_v7 = vmul.f32 %v1326_v5, %v187_v0  ;;  %v379_v8 = vpop.f32.mrb[7].mxu0 }
 0x1b7   :  { %v454_v9 = vmul.f32 %v379_v8, %v186_v2  ;;  %1391 = vmatprep.mubr.msk.f32.mxu0 %vm644_vm1, %v555_v4  ;;  %v1825_v2 = vmov 0.0|0.0   ;;  %v2098_v4 = vld [vmem:[#allocation13] ss:$0 sm:$0xff] }
 0x1b8   :  { %v570_v11 = vadd.f32 %v1358_v38, %v455_v7  ;;  %1392 = vmatmul.mubr.msk.f32.gmra.mrb[24].mxu0 %vm644_vm1, %v560_v1  ;;  %v1370_v13 = vpop.f32.mrb[14].mxu1  ;;  %1461 = vmatprep.subr.bf16.mxu1 %v1825_v2 }
 0x1b9   :  { %v565_v14 = vadd.f32 %v564_v40, %v454_v9  ;;  %v1329_v15 = vpop.f32.mrb[8].mxu0  ;;  %v604_v16 = vpop.f32.mrb[15].mxu1  ;;  %v195_v40 = vld [vmem:[#allocation7 + $0x78] sm:$0xff] }
 0x1ba   :  { %v457_v17 = vmul.f32 %v1329_v15, %v189_v10  ;;  %v389_v18 = vpop.f32.mrb[9].mxu0 }
 0x1bb   :  { %v456_v19 = vmul.f32 %v389_v18, %v188_v12  ;;  %1394 = vmatprep.mubr.msk.f32.mxu0 %vm644_vm1, %v565_v14 }
 0x1bc   :  { %v580_v21 = vadd.f32 %v1361_v47, %v457_v17  ;;  %1395 = vmatmul.mubr.msk.f32.gmra.mrb[26].mxu0 %vm644_vm1, %v570_v11  ;;  %v1373_v23 = vpop.f32.mrb[16].mxu1 }
 0x1bd   :  { %v575_v24 = vadd.f32 %v574_v50, %v456_v19  ;;  %v1332_v25 = vpop.f32.mrb[10].mxu0  ;;  %v614_v26 = vpop.f32.mrb[17].mxu1  ;;  %v196_v50 = vld [vmem:[#allocation7 + $0x80] sm:$0xff] }
 0x1be   :  { %v459_v27 = vmul.f32 %v1332_v25, %v191_v20  ;;  %v399_v28 = vpop.f32.mrb[11].mxu0 }
 0x1bf   :  { %v458_v29 = vmul.f32 %v399_v28, %v190_v22  ;;  %1397 = vmatprep.mubr.msk.f32.mxu0 %vm644_vm1, %v575_v24 }
 0x1c0   :  { %v590_v31 = vadd.f32 %v1364_v57, %v459_v27  ;;  %1398 = vmatmul.mubr.msk.f32.gmra.mrb[28].mxu0 %vm644_vm1, %v580_v21  ;;  %v1376_v33 = vpop.f32.mrb[18].mxu1 }
 0x1c1   :  { %v585_v34 = vadd.f32 %v584_v60, %v458_v29  ;;  %v1335_v35 = vpop.f32.mrb[12].mxu0  ;;  %v624_v36 = vpop.f32.mrb[19].mxu1 }
 0x1c2   :  { %v461_v37 = vmul.f32 %v1335_v35, %v193_v30  ;;  %v409_v38 = vpop.f32.mrb[13].mxu0 }
 0x1c3   :  { %v460_v39 = vmul.f32 %v409_v38, %v192_v32  ;;  %1400 = vmatprep.mubr.msk.f32.mxu0 %vm644_vm1, %v585_v34 }
 0x1c4   :  { %v600_v41 = vadd.f32 %v1367_v3, %v461_v37  ;;  %1401 = vmatmul.mubr.msk.f32.gmra.mrb[30].mxu0 %vm644_vm1, %v590_v31  ;;  %v221_v3 = vld [vmem:[#allocation10 + $0x8] sm:$0xff] }
 0x1c5   :  { %v595_v43 = vadd.f32 %v594_v6, %v460_v39  ;;  %v1338_v44 = vpop.f32.mrb[14].mxu0  ;;  %1224 = vmatprep.mubr.msk.f32.mxu1 %vm644_vm1, %v221_v3 }
 0x1c6   :  { %v463_v45 = vmul.f32 %v1338_v44, %v195_v40  ;;  %v419_v46 = vpop.f32.mrb[15].mxu0 }
 0x1c7   :  { %v462_v47 = vmul.f32 %v419_v46, %v194_v42  ;;  %1403 = vmatprep.mubr.msk.f32.mxu0 %vm644_vm1, %v595_v43 }
 0x1c8   :  { %v610_v49 = vadd.f32 %v1370_v13, %v463_v45  ;;  %1404 = vmatmul.mubr.msk.f32.gmra.mrb[32].mxu0 %vm644_vm1, %v600_v41 }
 0x1c9   :  { %v605_v51 = vadd.f32 %v604_v16, %v462_v47  ;;  %v1341_v52 = vpop.f32.mrb[16].mxu0 }
 0x1ca   :  { %v465_v53 = vmul.f32 %v1341_v52, %v197_v48  ;;  %v429_v54 = vpop.f32.mrb[17].mxu0 }
 0x1cb   :  { %v464_v55 = vmul.f32 %v429_v54, %v196_v50  ;;  %1406 = vmatprep.mubr.msk.f32.mxu0 %vm644_vm1, %v605_v51 }
 0x1cc   :  { %v620_v57 = vadd.f32 %v1373_v23, %v465_v53  ;;  %1407 = vmatmul.mubr.msk.f32.gmra.mrb[34].mxu0 %vm644_vm1, %v610_v49 }
 0x1cd   :  { %v615_v59 = vadd.f32 %v614_v26, %v464_v55  ;;  %v1344_v60 = vpop.f32.mrb[18].mxu0 }
 0x1ce   :  { %v467_v61 = vmul.f32 %v1344_v60, %v199_v56  ;;  %v439_v62 = vpop.f32.mrb[19].mxu0 }
 0x1cf   :  { %v466_v63 = vmul.f32 %v439_v62, %v198_v58  ;;  %1409 = vmatprep.mubr.msk.f32.mxu0 %vm644_vm1, %v615_v59 }
 0x1d0   :  { %v630_v0 = vadd.f32 %v1376_v33, %v467_v61  ;;  %1410 = vmatmul.mubr.msk.f32.gmra.mrb[36].mxu0 %vm644_vm1, %v620_v57 }
 0x1d1   :  { %v625_v1 = vadd.f32 %v624_v36, %v466_v63 }
 0x1d3   :  { %1412 = vmatprep.mubr.msk.f32.mxu0 %vm644_vm1, %v625_v1 }
 0x1d4   :  { %1413 = vmatmul.mubr.msk.f32.gmra.mrb[38].mxu0 %vm644_vm1, %v630_v0 }
 0x282   :  { %v1387_v5 = vpop.f32.mrb[20].mxu0 }
 0x283   :  { %v777_v6 = vadd.f32 %v1387_v5, %v2098_v4  ;;  %v771_v7 = vpop.f32.mrb[21].mxu0 }
 0x284   :  { %v772_v8 = vadd.f32 %v2098_v4, %v771_v7 }
 0x285   :  { %v871_v9 = vmax.f32 %v777_v6, 0.0 }
 0x286   :  { %v870_v10 = vmax.f32 %v772_v8, 0.0 }
 0x287   :  { %v1390_v11 = vpop.f32.mrb[22].mxu0 }
 0x288   :  { %v787_v12 = vadd.f32 %v1390_v11, %v2098_v4  ;;  %v781_v13 = vpop.f32.mrb[23].mxu0  ;;  %v1462_v14 = vpack.c.bf16 %v871_v9, %v870_v10 }
 0x289   :  { %v782_v15 = vadd.f32 %v2098_v4, %v781_v13  ;;  %v964_v13 = vld [vmem:[#allocation14 + $0x8] sm:$0xff] }
 0x28a   :  { %v873_v16 = vmax.f32 %v787_v12, 0.0  ;;  %1463 = vmatpush1.bf16.msra.mxu1 %v1462_v14  ;;  %v963_v12 = vld [vmem:[#allocation14] sm:$0xff] }
 0x28b   :  { %v872_v17 = vmax.f32 %v782_v15, 0.0  ;;  %v1393_v18 = vpop.f32.mrb[24].mxu0  ;;  %1464 = vmatprep.subr.bf16.mxu1 %v1825_v2  ;;  %v220_v15 = vld [vmem:[#allocation10] sm:$0xff] }
 0x28c   :  { %v797_v19 = vadd.f32 %v1393_v18, %v2098_v4  ;;  %v791_v20 = vpop.f32.mrb[25].mxu0  ;;  %v966_v18 = vld [vmem:[#allocation14 + $0x18] sm:$0xff] }
 0x28d   :  { %v1465_v21 = vpack.c.bf16 %v873_v16, %v872_v17  ;;  %v792_v22 = vadd.f32 %v2098_v4, %v791_v20  ;;  %v1492_v16 = vpack.c.bf16 %v964_v13, %v963_v12  ;;  %v965_v17 = vld [vmem:[#allocation14 + $0x10] sm:$0xff]  ;;  %v968_v20 = vld [vmem:[#allocation14 + $0x28] sm:$0xff] }
 0x28e   :  { %v875_v23 = vmax.f32 %v797_v19, 0.0  ;;  %v1495_v19 = vpack.c.bf16 %v966_v18, %v965_v17 }
 0x28f   :  { %v874_v24 = vmax.f32 %v792_v22, 0.0  ;;  %v1396_v25 = vpop.f32.mrb[26].mxu0  ;;  %1466 = vmatpush1.bf16.msra.mxu1 %v1465_v21  ;;  %v969_v22 = vld [vmem:[#allocation14 + $0x30] sm:$0xff] }
 0x290   :  { %v807_v26 = vadd.f32 %v1396_v25, %v2098_v4  ;;  %v801_v27 = vpop.f32.mrb[27].mxu0  ;;  %1467 = vmatprep.subr.bf16.mxu1 %v1825_v2  ;;  %v1827_v25 = vmov 0.0  }
 0x291   :  { %v1468_v28 = vpack.c.bf16 %v875_v23, %v874_v24  ;;  %v802_v29 = vadd.f32 %v2098_v4, %v801_v27  ;;  %v970_v23 = vld [vmem:[#allocation14 + $0x38] sm:$0xff]  ;;  %v1054_v27 = vld [vmem:[#allocation17 + $0x8] sm:$0xff] }
 0x292   :  { %v877_v30 = vmax.f32 %v807_v26, 0.0  ;;  %v1501_v24 = vpack.c.bf16 %v970_v23, %v969_v22  ;;  %v1053_v26 = vld [vmem:[#allocation17] sm:$0xff] }
 0x293   :  { %v876_v31 = vmax.f32 %v802_v29, 0.0  ;;  %v1399_v32 = vpop.f32.mrb[28].mxu0  ;;  %1469 = vmatpush1.bf16.msra.mxu1 %v1468_v28  ;;  %v1504_v28 = vpack.c.bf16 %v1054_v27, %v1053_v26  ;;  %v1055_v29 = vld [vmem:[#allocation17 + $0x10] sm:$0xff] }
 0x294   :  { %v817_v33 = vadd.f32 %v1399_v32, %v2098_v4  ;;  %v811_v34 = vpop.f32.mrb[29].mxu0  ;;  %1470 = vmatprep.subr.bf16.mxu1 %v1825_v2 }
 0x295   :  { %v1471_v35 = vpack.c.bf16 %v877_v30, %v876_v31  ;;  %v812_v36 = vadd.f32 %v2098_v4, %v811_v34  ;;  %v1056_v30 = vld [vmem:[#allocation17 + $0x18] sm:$0xff]  ;;  %v1057_v34 = vld [vmem:[#allocation17 + $0x20] sm:$0xff] }
 0x296   :  { %v879_v37 = vmax.f32 %v817_v33, 0.0  ;;  %v1507_v33 = vpack.c.bf16 %v1056_v30, %v1055_v29 }
 0x297   :  { %v878_v38 = vmax.f32 %v812_v36, 0.0  ;;  %v1402_v39 = vpop.f32.mrb[30].mxu0  ;;  %1472 = vmatpush1.bf16.msra.mxu1 %v1471_v35  ;;  %v1058_v35 = vld [vmem:[#allocation17 + $0x28] sm:$0xff] }
 0x298   :  { %v827_v40 = vadd.f32 %v1402_v39, %v2098_v4  ;;  %v821_v41 = vpop.f32.mrb[31].mxu0  ;;  %1473 = vmatprep.subr.bf16.mxu1 %v1825_v2  ;;  %v1510_v36 = vpack.c.bf16 %v1058_v35, %v1057_v34 }
 0x299   :  { %v1474_v42 = vpack.c.bf16 %v879_v37, %v878_v38  ;;  %v822_v43 = vadd.f32 %v2098_v4, %v821_v41  ;;  %v1059_v37 = vld [vmem:[#allocation17 + $0x30] sm:$0xff]  ;;  %v1060_v38 = vld [vmem:[#allocation17 + $0x38] sm:$0xff] }
 0x29a   :  { %v881_v44 = vmax.f32 %v827_v40, 0.0  ;;  %v1513_v39 = vpack.c.bf16 %v1060_v38, %v1059_v37  ;;  %v1225_v40 = vld [vmem:[#allocation16] ss:$0 sm:$0xff] }
 0x29b   :  { %v880_v45 = vmax.f32 %v822_v43, 0.0  ;;  %v1405_v46 = vpop.f32.mrb[32].mxu0  ;;  %1475 = vmatpush1.bf16.msra.mxu1 %v1474_v42 }
 0x29c   :  { %v837_v47 = vadd.f32 %v1405_v46, %v2098_v4  ;;  %v831_v48 = vpop.f32.mrb[33].mxu0  ;;  %1476 = vmatprep.subr.bf16.mxu1 %v1825_v2 }
 0x29d   :  { %v1477_v49 = vpack.c.bf16 %v881_v44, %v880_v45  ;;  %v832_v50 = vadd.f32 %v2098_v4, %v831_v48  ;;  %v1227_v45 = vld [vmem:[#allocation19] ss:$0 sm:$0xff] }
 0x29e   :  { %v883_v51 = vmax.f32 %v837_v47, 0.0 }
 0x29f   :  { %v882_v52 = vmax.f32 %v832_v50, 0.0  ;;  %v1408_v53 = vpop.f32.mrb[34].mxu0  ;;  %1478 = vmatpush1.bf16.msra.mxu1 %v1477_v49 }
 0x2a0   :  { %v847_v54 = vadd.f32 %v1408_v53, %v2098_v4  ;;  %v841_v55 = vpop.f32.mrb[35].mxu0  ;;  %1479 = vmatprep.subr.bf16.mxu1 %v1825_v2 }
 0x2a1   :  { %v1480_v56 = vpack.c.bf16 %v883_v51, %v882_v52  ;;  %v842_v57 = vadd.f32 %v2098_v4, %v841_v55 }
 0x2a2   :  { %v885_v58 = vmax.f32 %v847_v54, 0.0 }
 0x2a3   :  { %v884_v59 = vmax.f32 %v842_v57, 0.0  ;;  %v1411_v60 = vpop.f32.mrb[36].mxu0  ;;  %1481 = vmatpush1.bf16.msra.mxu1 %v1480_v56 }
 0x2a4   :  { %v857_v61 = vadd.f32 %v1411_v60, %v2098_v4  ;;  %v851_v62 = vpop.f32.mrb[37].mxu0  ;;  %1482 = vmatprep.subr.bf16.mxu1 %v1825_v2 }
 0x2a5   :  { %v1483_v63 = vpack.c.bf16 %v885_v58, %v884_v59  ;;  %v852_v0 = vadd.f32 %v2098_v4, %v851_v62 }
 0x2a6   :  { %v887_v1 = vmax.f32 %v857_v61, 0.0 }
 0x2a7   :  { %v886_v3 = vmax.f32 %v852_v0, 0.0  ;;  %v1414_v5 = vpop.f32.mrb[38].mxu0  ;;  %1484 = vmatpush1.bf16.msra.mxu1 %v1483_v63 }
 0x2a8   :  { %v867_v6 = vadd.f32 %v1414_v5, %v2098_v4  ;;  %v861_v7 = vpop.f32.mrb[39].mxu0  ;;  %1485 = vmatprep.subr.bf16.mxu1 %v1825_v2 }
 0x2a9   :  { %v1486_v8 = vpack.c.bf16 %v887_v1, %v886_v3  ;;  %v862_v9 = vadd.f32 %v2098_v4, %v861_v7  ;;  %v967_v4 = vld [vmem:[#allocation14 + $0x20] sm:$0xff] }
 0x2aa   :  { %v889_v10 = vmax.f32 %v867_v6, 0.0  ;;  %v1498_v21 = vpack.c.bf16 %v968_v20, %v967_v4 }
 0x2ab   :  { %v888_v11 = vmax.f32 %v862_v9, 0.0  ;;  %1487 = vmatpush1.bf16.msra.mxu1 %v1486_v8 }
 0x2ac   :  { %1488 = vmatprep.subr.bf16.mxu1 %v1825_v2 }
 0x2ad   :  { %v1489_v14 = vpack.c.bf16 %v889_v10, %v888_v11 }
 0x2af   :  { %1490 = vmatpush1.bf16.msra.mxu1 %v1489_v14 }
 0x2b0   :  { %1491 = vmatprep.subr.bf16.mxu1 %v1825_v2 }
 0x2b2   :  { %958 = vmatmul.mubr.f32.vlgmr.msra.gmra.mrb[20].mxu1 %v220_v15 }
 0x2b3   :  { %1493 = vmatpush3.bf16.msra.mxu1 %v1492_v16  ;;  %1431 = vmatprep.mubr.msk.f32.mxu1 %vm1826_vm2, %v1827_v25 }
 0x2b4   :  { %1494 = vmatprep.subr.bf16.mxu1 %v1825_v2 }
 0x2b7   :  { %1496 = vmatpush3.bf16.msra.mxu1 %v1495_v19 }
 0x2b8   :  { %1497 = vmatprep.subr.bf16.mxu1 %v1825_v2 }
 0x2bb   :  { %1499 = vmatpush3.bf16.msra.mxu1 %v1498_v21 }
 0x2bc   :  { %1500 = vmatprep.subr.bf16.mxu1 %v1825_v2 }
 0x2bf   :  { %1502 = vmatpush3.bf16.msra.mxu1 %v1501_v24 }
 0x2c0   :  { %1503 = vmatprep.subr.bf16.mxu1 %v1825_v2 }
 0x385   :  { %v959_v31 = vpop.f32.mrb[20].mxu1 }
 0x386   :  { %v961_v32 = vpop.f32.mrb[21].mxu1  ;;  %1432 = vmatmul.mubr.msk.f32.vlgmr.msra.gmra.mrb[22].mxu1 %vm978_vm3, %v959_v31 }
 0x387   :  { %1505 = vmatpush3.bf16.msra.mxu1 %v1504_v28  ;;  %1450 = vmatprep.mubr.msk.f32.mxu1 %vm1826_vm2, %v1827_v25 }
 0x388   :  { %1506 = vmatprep.subr.bf16.mxu1 %v1825_v2 }
 0x38b   :  { %1508 = vmatpush3.bf16.msra.mxu1 %v1507_v33 }
 0x38c   :  { %1509 = vmatprep.subr.bf16.mxu1 %v1825_v2 }
 0x38f   :  { %1511 = vmatpush3.bf16.msra.mxu1 %v1510_v36 }
 0x390   :  { %1512 = vmatprep.subr.bf16.mxu1 %v1825_v2 }
 0x393   :  { %1514 = vmatpush3.bf16.msra.mxu1 %v1513_v39 }
 0x459   :  { %v1048_v41 = vpop.f32.mrb[22].mxu1 }
 0x45a   :  { %v1049_v42 = vadd.f32 %v1225_v40, %v1048_v41  ;;  %v1433_v43 = vpop.f32.mrb[23].mxu1 }
 0x45c   :  { %v1052_v44 = vmax.f32 %v1049_v42, 0.0 }
 0x45e   :  { %1451 = vmatmul.mubr.msk.f32.vlgmr.msra.gmra.mrb[24].mxu1 %vm978_vm3, %v1052_v44 }
 0x531   :  { %v1137_v46 = vpop.f32.mrb[24].mxu1 }
 0x532   :  { %v1138_v47 = vadd.f32 %v1227_v45, %v1137_v46  ;;  %v1452_v48 = vpop.f32.mrb[25].mxu1 }
 0x534   :  { %1142 = vst.msk [vmem:[#allocation20] sm:$0xff] %vm1141_vm4, %v1138_v47 }
 0x535   :  { %1787 = shalt.err (!%p1784_p8)
}
 0x536   :  { %s1788_s21 = scalar_lea.hbm %s2162_s11, 128 }
 0x537   :  { %p1789_p9 = scmp.ne.s32.totalorder %s2162_s11, %s1788_s21  ;;  %p1792_p10 = scmp.lt.u32.totalorder %s1788_s21, %s2162_s11 }
 0x539   :  { %p1794_p11 = pnand %p1792_p10, %p1789_p9 }
 0x53b   :  { %1797 = shalt.err (!%p1794_p11)
}
 0x53c   :  { %1152 = dma.vmem_to_hbm [thread:$0]  %s1150_s7, 128, %s2162_s11, [#allocation4]  }
 0x53d   :  { %1810 = dma.done.wait [#allocation4], 128  }
 0x53e   :  { %1811 = vsyncadd [#allocation4], 4294967168 }
 0x53f   :  { %1156 = vsyncpa [#allocation3], 1 }
 0x540   :  { %1157 = vsyncpa [#allocation6], 1 }
 0x541   :  { %1158 = vsyncpa [#allocation9], 1 }
 0x542   :  { %1159 = vsyncpa [#allocation12], 1 }
 0x543   :  { %1160 = vsyncpa [#allocation15], 1 }
 0x544   :  { %1161 = vsyncpa [#allocation18], 1 }
 0x545   :  { %1162 = vsyncpa [#allocation4], 1 }

</bundles_post_ra>
